<compile_context>
chip_gen: v7x
topology: tpu7x:2x2x1
jax: 0.10.0
libtpu: 0.0.40
codegen_flags: <defaults>
</compile_context>

<pallas_src>
import functools

import jax
import jax.numpy as jnp
from jax.experimental import pallas as pl
from jax.experimental.pallas import tpu as pltpu


# --------------------------------------------------------------------------- #
# Kernel
# --------------------------------------------------------------------------- #
def _basic_block_kernel(x_ref, w1_ref, s1_ref, b1_ref, w2_ref, s2_ref, b2_ref,
                        *rest, stride, Ho, has_sc_conv):
    if has_sc_conv:
        wsc_ref, ssc_ref, bsc_ref, out_ref = rest
    else:
        (out_ref,) = rest

    f32 = jnp.float32
    dd = w1_ref.dtype                      # dot-operand dtype (== activation dtype)
    B, Hp, KC = x_ref.shape                # B images, H+2 padded rows, W*Cin lanes
    n_lane = out_ref.shape[2]              # Wo * Cout
    BHo = B * Ho

    xd = x_ref[...]                        # (B, Hp, KC), already in dot dtype

    def tap(val, dy):
        """Rows feeding output rows 0..Ho-1 at kernel-row offset dy -> (B*Ho, k)."""
        if stride == 1:
            rows = val[:, dy:dy + Ho, :]
        else:
            # TODO(synk): pre-split by stride in the wrapper for a unit-stride slice.
            rows = val[:, dy:dy + (Ho - 1) * stride + 1:stride, :]
        return rows.reshape(BHo, val.shape[2])

    # ---- conv1 (3x3, stride, pad=1, no bias): 3 banded MXU matmuls ---------- #
    acc1 = jnp.dot(tap(xd, 0), w1_ref[0], preferred_element_type=f32)
    acc1 = acc1 + jnp.dot(tap(xd, 1), w1_ref[1], preferred_element_type=f32)
    acc1 = acc1 + jnp.dot(tap(xd, 2), w1_ref[2], preferred_element_type=f32)

    # bn1 (inference-folded scale/bias) + relu, kept f32 on the VPU.
    h = jnp.maximum(acc1 * s1_ref[...] + b1_ref[...], 0.0)      # (B*Ho, n_lane) f32

    # ---- conv2 (3x3, stride=1, pad=1): dy=1 on h directly; dy=0/2 via halo --- #
    hd = h.astype(dd) if dd != f32 else h                        # single hoisted cast
    acc2 = jnp.dot(hd, w2_ref[1], preferred_element_type=f32)    # aligned, no slice
    h3 = hd.reshape(B, Ho, n_lane)
    zrow = jnp.zeros((B, 1, n_lane), dd)
    hp = jnp.concatenate([zrow, h3, zrow], axis=1)               # (B, Ho+2, n_lane)
    acc2 = acc2 + jnp.dot(hp[:, 0:Ho, :].reshape(BHo, n_lane), w2_ref[0],
                          preferred_element_type=f32)
    acc2 = acc2 + jnp.dot(hp[:, 2:Ho + 2, :].reshape(BHo, n_lane), w2_ref[2],
                          preferred_element_type=f32)
    out = acc2 * s2_ref[...] + b2_ref[...]                       # bn2, f32

    # ---- shortcut ----------------------------------------------------------- #
    xs = tap(xd, 1)      # interior (un-padded) rows, already stride-subsampled
    if has_sc_conv:
        sc = jnp.dot(xs, wsc_ref[...], preferred_element_type=f32)
        sc = sc * ssc_ref[...] + bsc_ref[...]
    else:
        # identity: stride==1 and Cin==Cout -> folded interior rows ARE the
        # residual, already in the output layout.
        sc = xs.astype(f32) if dd != f32 else xs

    res = jnp.maximum(out + sc, 0.0)
    out_ref[...] = res.reshape(B, Ho, n_lane).astype(out_ref.dtype)


# --------------------------------------------------------------------------- #
# Wrapper-side weight folding (banded matrices, lane-folded BN vectors)
# --------------------------------------------------------------------------- #
def _band_3x3(w, w_in, w_out, stride):
    """(3,3,Ci,Co) HWIO -> (3, w_in*Ci, w_out*Co) banded matrices.

    band[dy, wi*Ci+ci, wo*Co+co] = w[dy, wi - stride*wo + 1, ci, co]
    when 0 <= wi - stride*wo + 1 <= 2, else 0 (folds the W zero-padding).
    """
    ci, co = w.shape[2], w.shape[3]
    wi = jnp.arange(w_in)[:, None]
    wo = jnp.arange(w_out)[None, :]
    dx = wi - stride * wo + 1
    valid = ((dx >= 0) & (dx <= 2)).astype(w.dtype)
    blocks = w[:, jnp.clip(dx, 0, 2)] * valid[None, :, :, None, None]
    # (3, w_in, w_out, ci, co) -> (3, w_in, ci, w_out, co) -> fold
    return jnp.transpose(blocks, (0, 1, 3, 2, 4)).reshape(3, w_in * ci, w_out * co)


def _band_1x1(w, w_in, w_out, stride):
    """(Ci,Co) -> (w_in*Ci, w_out*Co); block (wi,wo) = w iff wi == stride*wo."""
    ci, co = w.shape
    sel = (jnp.arange(w_in)[:, None] == stride * jnp.arange(w_out)[None, :])
    band = sel.astype(w.dtype)[:, None, :, None] * w[None, :, None, :]
    return band.reshape(w_in * ci, w_out * co)


def _tile_lane(v, w_out):
    """Per-channel vector (C,) -> lane-folded row (1, w_out*C), f32."""
    return jnp.tile(v.astype(jnp.float32), (w_out,)).reshape(1, -1)


def fold_block_params(params, W, stride, dot_dtype=jnp.float32):
    """Precompute lane-folded banded weights and BN scale/bias for the kernel."""
    Wo = (W - 1) // stride + 1
    fp = {
        "w1b": _band_3x3(params["w1"], W, Wo, stride).astype(dot_dtype),
        "w2b": _band_3x3(params["w2"], Wo, Wo, 1).astype(dot_dtype),
        "s1": _tile_lane(params["s1"], Wo), "b1": _tile_lane(params["b1"], Wo),
        "s2": _tile_lane(params["s2"], Wo), "b2": _tile_lane(params["b2"], Wo),
        "has_sc_conv": params["has_sc_conv"],
    }
    if params["has_sc_conv"]:
        fp["wscb"] = _band_1x1(params["wsc"][0, 0], W, Wo, stride).astype(dot_dtype)
        fp["ssc"] = _tile_lane(params["ssc"], Wo)
        fp["bsc"] = _tile_lane(params["bsc"], Wo)
    return fp


# --------------------------------------------------------------------------- #
# Forward passes
# --------------------------------------------------------------------------- #
def basic_block_forward_folded(xf, fp, *, stride=1, out_dtype=jnp.float32,
                               batch_block=8):
    """xf: (N, H+2, W*Cin) lane-folded, H zero-padded (rows 0 and H+1), in the
    dot/activation dtype.  Returns (N, Ho, Wo*Cout) lane-folded.  Chained
    blocks can stay in this layout (re-pad H between blocks) and skip all
    NCHW<->NHWC transposes."""
    N, Hp, KC = xf.shape
    H = Hp - 2
    Ho = (H - 1) // stride + 1
    n_lane = fp["s1"].shape[1]             # Wo * Cout
    has_sc = fp["has_sc_conv"]

    # Batch-block the grid: B images per step so each matmul runs at M = B*Ho.
    # (For v7x, pick batch_block so ceil(N/B) is a multiple of 2 TCs.)
    B = min(batch_block, N)
    Np = ((N + B - 1) // B) * B
    if Np != N:
        xf = jnp.pad(xf, ((0, Np - N), (0, 0), (0, 0)))
    grid = (Np // B,)

    args = [xf, fp["w1b"], fp["s1"], fp["b1"], fp["w2b"], fp["s2"], fp["b2"]]
    if has_sc:
        args += [fp["wscb"], fp["ssc"], fp["bsc"]]

    def _const_spec(a):
        nd = a.ndim
        return pl.BlockSpec(a.shape, lambda n: (0,) * nd)

    in_specs = [pl.BlockSpec((B, Hp, KC), lambda n: (n, 0, 0))]
    in_specs += [_const_spec(a) for a in args[1:]]

    kernel = functools.partial(_basic_block_kernel, stride=stride, Ho=Ho,
                               has_sc_conv=has_sc)

    # Advisory cost (flops counted on the actual banded matmul shapes).
    flops = 2 * Np * Ho * n_lane * (3 * KC + 3 * n_lane + (KC if has_sc else 0))
    bytes_accessed = sum(int(a.size) * a.dtype.itemsize for a in args)
    bytes_accessed += int(Np * Ho * n_lane) * jnp.dtype(out_dtype).itemsize

    out = pl.pallas_call(
        kernel,
        grid=grid,
        in_specs=in_specs,
        out_specs=pl.BlockSpec((B, Ho, n_lane), lambda n: (n, 0, 0)),
        out_shape=jax.ShapeDtypeStruct((Np, Ho, n_lane), out_dtype),
        compiler_params=pltpu.CompilerParams(
            dimension_semantics=("parallel",),   # megacore / v7x 2-TC sharding
        ),
        cost_estimate=pl.CostEstimate(flops=int(flops), transcendentals=0,
                                      bytes_accessed=int(bytes_accessed)),
    )(*args)
    return out[:N] if Np != N else out


def basic_block_forward(x_nchw, params, stride=1, compute_dtype=jnp.float32,
                        batch_block=8, out_dtype=jnp.float32):
    """NCHW in / NCHW out (matches the PyTorch module's forward).

    compute_dtype: dtype of activations in HBM and of the MXU dot operands
    (bf16 recommended on v5e/v6e/v7x).  Accumulation, BN and the residual math
    stay float32.
    """
    N, Cin, H, W = x_nchw.shape
    Cout = params["w1"].shape[3]
    Ho = (H - 1) // stride + 1
    Wo = (W - 1) // stride + 1

    fp = fold_block_params(params, W, stride, compute_dtype)

    # NCHW -> lane-folded (N, H, W*Cin) in the compute dtype; zero-pad H only
    # (the W padding is folded into the banded weights).
    xf = jnp.transpose(x_nchw, (0, 2, 3, 1)).reshape(N, H, W * Cin)
    xf = jnp.pad(xf, ((0, 0), (1, 1), (0, 0))).astype(compute_dtype)

    out = basic_block_forward_folded(xf, fp, stride=stride, out_dtype=out_dtype,
                                     batch_block=batch_block)
    out = out.astype(jnp.float32).reshape(N, Ho, Wo, Cout)
    return jnp.transpose(out, (0, 3, 1, 2))


# --------------------------------------------------------------------------- #
# Parameters + pure-JAX reference
# --------------------------------------------------------------------------- #
def init_params(key, in_planes, planes, stride=1, eps=1e-5):
    """Deterministic synthetic parameters (HWIO conv weights, folded BN)."""
    ks = jax.random.split(key, 6)

    def bn(k, c):
        kg, kb, km, kv = jax.random.split(k, 4)
        gamma = 1.0 + 0.1 * jax.random.normal(kg, (c,), jnp.float32)
        beta = 0.1 * jax.random.normal(kb, (c,), jnp.float32)
        mean = 0.1 * jax.random.normal(km, (c,), jnp.float32)
        var = jnp.abs(jax.random.normal(kv, (c,), jnp.float32)) + 0.5
        scale = gamma / jnp.sqrt(var + eps)
        return scale, beta - mean * scale

    p = {"w1": 0.2 * jax.random.normal(ks[0], (3, 3, in_planes, planes), jnp.float32),
         "w2": 0.2 * jax.random.normal(ks[1], (3, 3, planes, planes), jnp.float32)}
    p["s1"], p["b1"] = bn(ks[2], planes)
    p["s2"], p["b2"] = bn(ks[3], planes)
    p["has_sc_conv"] = (stride != 1) or (in_planes != planes)
    if p["has_sc_conv"]:
        p["wsc"] = 0.2 * jax.random.normal(ks[4], (1, 1, in_planes, planes),
                                           jnp.float32)
        p["ssc"], p["bsc"] = bn(ks[5], planes)
    return p


def reference_forward(x_nchw, p, stride):
    """Pure-JAX reference (XLA convs) for correctness checking."""
    x = jnp.transpose(x_nchw, (0, 2, 3, 1)).astype(jnp.float32)
    dn = ("NHWC", "HWIO", "NHWC")

    def conv(a, w, s, pad):
        return jax.lax.conv_general_dilated(a, w, (s, s),
                                            ((pad, pad), (pad, pad)),
                                            dimension_numbers=dn)

    h = jnp.maximum(conv(x, p["w1"], stride, 1) * p["s1"] + p["b1"], 0.0)
    o = conv(h, p["w2"], 1, 1) * p["s2"] + p["b2"]
    if p["has_sc_conv"]:
        sc = conv(x, p["wsc"], stride, 0) * p["ssc"] + p["bsc"]
    else:
        sc = x
    return jnp.transpose(jnp.maximum(o + sc, 0.0), (0, 3, 1, 2))


# --------------------------------------------------------------------------- #
# Tests
# --------------------------------------------------------------------------- #
if __name__ == "__main__":
    key = jax.random.PRNGKey(0)
    kx1, kp1, kx2, kp2 = jax.random.split(key, 4)

    # 1) projection-shortcut config (in_planes != planes), f32 compute.
    N, Cin, H, W, planes, stride = 2, 4, 16, 16, 8, 1
    x1 = jax.random.normal(kx1, (N, Cin, H, W), jnp.float32)
    p1 = init_params(kp1, Cin, planes, stride)
    out1 = jax.block_until_ready(basic_block_forward(x1, p1, stride))
    ref1 = reference_forward(x1, p1, stride)
    assert out1.shape == (N, planes, H, W), out1.shape
    err1 = float(jnp.max(jnp.abs(out1 - ref1)))
    assert err1 < 1e-3, f"projection-shortcut max_err={err1}"

    # 2) identity-shortcut config (stride=1, in_planes == planes), f32 compute.
    x2 = jax.random.normal(kx2, (N, planes, H, W), jnp.float32)
    p2 = init_params(kp2, planes, planes, 1)
    out2 = jax.block_until_ready(basic_block_forward(x2, p2, 1))
    ref2 = reference_forward(x2, p2, 1)
    err2 = float(jnp.max(jnp.abs(out2 - ref2)))
    assert err2 < 1e-3, f"identity-shortcut max_err={err2}"

    # 3) bf16 activations + dot operands (f32 accumulate / elementwise) --
    #    the v5e/v6e/v7x MXU-native path with halved activation DMA.
    out3 = jax.block_until_ready(
        basic_block_forward(x1, p1, stride, compute_dtype=jnp.bfloat16))
    err3 = float(jnp.max(jnp.abs(out3 - ref1)))
    tol3 = 1e-1 * (float(jnp.max(jnp.abs(ref1))) + 1.0)
    assert err3 < tol3, f"bf16 max_err={err3}"

    print("KERNEL_OK")
</pallas_src>

<mosaic_0001>
module attributes {stable_mosaic.version = 11 : i64} {
  func.func @_basic_block_kernel(%arg0: i32, %arg1: memref<2x18x64xf32, #tpu.memory_space<vmem>>, %arg2: memref<3x64x128xf32, #tpu.memory_space<vmem>>, %arg3: memref<1x128xf32, #tpu.memory_space<vmem>>, %arg4: memref<1x128xf32, #tpu.memory_space<vmem>>, %arg5: memref<3x128x128xf32, #tpu.memory_space<vmem>>, %arg6: memref<1x128xf32, #tpu.memory_space<vmem>>, %arg7: memref<1x128xf32, #tpu.memory_space<vmem>>, %arg8: memref<64x128xf32, #tpu.memory_space<vmem>>, %arg9: memref<1x128xf32, #tpu.memory_space<vmem>>, %arg10: memref<1x128xf32, #tpu.memory_space<vmem>>, %arg11: memref<2x16x128xf32, #tpu.memory_space<vmem>>) attributes {dimension_semantics = [#tpu.dimension_semantics<parallel>], iteration_bounds = array<i64: 1>, scalar_prefetch = 0 : i64, scratch_operands = 0 : i64, tpu.core_type = #tpu.core_type<tc>, window_params = [{transform_indices = @transform_0, window_bounds = array<i64: 2, 18, 64>}, {pipeline_mode = #tpu.pipeline_mode<synchronous>, transform_indices = @transform_1, window_bounds = array<i64: 3, 64, 128>}, {pipeline_mode = #tpu.pipeline_mode<synchronous>, transform_indices = @transform_2, window_bounds = array<i64: 1, 128>}, {pipeline_mode = #tpu.pipeline_mode<synchronous>, transform_indices = @transform_3, window_bounds = array<i64: 1, 128>}, {pipeline_mode = #tpu.pipeline_mode<synchronous>, transform_indices = @transform_4, window_bounds = array<i64: 3, 128, 128>}, {pipeline_mode = #tpu.pipeline_mode<synchronous>, transform_indices = @transform_5, window_bounds = array<i64: 1, 128>}, {pipeline_mode = #tpu.pipeline_mode<synchronous>, transform_indices = @transform_6, window_bounds = array<i64: 1, 128>}, {pipeline_mode = #tpu.pipeline_mode<synchronous>, transform_indices = @transform_7, window_bounds = array<i64: 64, 128>}, {pipeline_mode = #tpu.pipeline_mode<synchronous>, transform_indices = @transform_8, window_bounds = array<i64: 1, 128>}, {pipeline_mode = #tpu.pipeline_mode<synchronous>, transform_indices = @transform_9, window_bounds = array<i64: 1, 128>}, {transform_indices = @transform_10, window_bounds = array<i64: 2, 16, 128>}]} {
    %c0 = arith.constant 0 : index
    %c0_0 = arith.constant 0 : index
    %c0_1 = arith.constant 0 : index
    %0 = vector.load %arg1[%c0, %c0_0, %c0_1] : memref<2x18x64xf32, #tpu.memory_space<vmem>>, vector<2x18x64xf32>
    %1 = vector.extract_strided_slice %0 {offsets = [0, 0, 0], sizes = [2, 16, 64], strides = [1, 1, 1]} : vector<2x18x64xf32> to vector<2x16x64xf32>
    %2 = vector.shape_cast %1 : vector<2x16x64xf32> to vector<32x64xf32>
    %c0_2 = arith.constant 0 : index
    %c0_3 = arith.constant 0 : index
    %c0_4 = arith.constant 0 : index
    %3 = vector.load %arg2[%c0_2, %c0_3, %c0_4] : memref<3x64x128xf32, #tpu.memory_space<vmem>>, vector<1x64x128xf32>
    %4 = vector.shape_cast %3 : vector<1x64x128xf32> to vector<64x128xf32>
    %cst = arith.constant dense<0.000000e+00> : vector<32x128xf32>
    %5 = tpu.matmul %2, %4, %cst {dimension_numbers = #tpu.dot_dimension_numbers<[1], [0], [0], [1], [0, 0, 1, 1], [], []>} : vector<32x64xf32>, vector<64x128xf32>, vector<32x128xf32> -> vector<32x128xf32>
    %6 = vector.extract_strided_slice %0 {offsets = [0, 1, 0], sizes = [2, 16, 64], strides = [1, 1, 1]} : vector<2x18x64xf32> to vector<2x16x64xf32>
    %7 = vector.shape_cast %6 : vector<2x16x64xf32> to vector<32x64xf32>
    %c1 = arith.constant 1 : index
    %c0_5 = arith.constant 0 : index
    %c0_6 = arith.constant 0 : index
    %8 = vector.load %arg2[%c1, %c0_5, %c0_6] : memref<3x64x128xf32, #tpu.memory_space<vmem>>, vector<1x64x128xf32>
    %9 = vector.shape_cast %8 : vector<1x64x128xf32> to vector<64x128xf32>
    %cst_7 = arith.constant dense<0.000000e+00> : vector<32x128xf32>
    %10 = tpu.matmul %7, %9, %cst_7 {dimension_numbers = #tpu.dot_dimension_numbers<[1], [0], [0], [1], [0, 0, 1, 1], [], []>} : vector<32x64xf32>, vector<64x128xf32>, vector<32x128xf32> -> vector<32x128xf32>
    %11 = arith.addf %5, %10 : vector<32x128xf32>
    %12 = vector.extract_strided_slice %0 {offsets = [0, 2, 0], sizes = [2, 16, 64], strides = [1, 1, 1]} : vector<2x18x64xf32> to vector<2x16x64xf32>
    %13 = vector.shape_cast %12 : vector<2x16x64xf32> to vector<32x64xf32>
    %c2 = arith.constant 2 : index
    %c0_8 = arith.constant 0 : index
    %c0_9 = arith.constant 0 : index
    %14 = vector.load %arg2[%c2, %c0_8, %c0_9] : memref<3x64x128xf32, #tpu.memory_space<vmem>>, vector<1x64x128xf32>
    %15 = vector.shape_cast %14 : vector<1x64x128xf32> to vector<64x128xf32>
    %cst_10 = arith.constant dense<0.000000e+00> : vector<32x128xf32>
    %16 = tpu.matmul %13, %15, %cst_10 {dimension_numbers = #tpu.dot_dimension_numbers<[1], [0], [0], [1], [0, 0, 1, 1], [], []>} : vector<32x64xf32>, vector<64x128xf32>, vector<32x128xf32> -> vector<32x128xf32>
    %17 = arith.addf %11, %16 : vector<32x128xf32>
    %c0_11 = arith.constant 0 : index
    %c0_12 = arith.constant 0 : index
    %18 = vector.load %arg3[%c0_11, %c0_12] : memref<1x128xf32, #tpu.memory_space<vmem>>, vector<1x128xf32>
    %19 = vector.broadcast %18 : vector<1x128xf32> to vector<32x128xf32>
    %20 = arith.mulf %17, %19 : vector<32x128xf32>
    %c0_13 = arith.constant 0 : index
    %c0_14 = arith.constant 0 : index
    %21 = vector.load %arg4[%c0_13, %c0_14] : memref<1x128xf32, #tpu.memory_space<vmem>>, vector<1x128xf32>
    %22 = vector.broadcast %21 : vector<1x128xf32> to vector<32x128xf32>
    %23 = arith.addf %20, %22 : vector<32x128xf32>
    %cst_15 = arith.constant 0.000000e+00 : f32
    %24 = vector.broadcast %cst_15 : f32 to vector<32x128xf32>
    %25 = arith.maximumf %23, %24 : vector<32x128xf32>
    %c1_16 = arith.constant 1 : index
    %c0_17 = arith.constant 0 : index
    %c0_18 = arith.constant 0 : index
    %26 = vector.load %arg5[%c1_16, %c0_17, %c0_18] : memref<3x128x128xf32, #tpu.memory_space<vmem>>, vector<1x128x128xf32>
    %27 = vector.shape_cast %26 : vector<1x128x128xf32> to vector<128x128xf32>
    %cst_19 = arith.constant dense<0.000000e+00> : vector<32x128xf32>
    %28 = tpu.matmul %25, %27, %cst_19 {dimension_numbers = #tpu.dot_dimension_numbers<[1], [0], [0], [1], [0, 0, 1, 1], [], []>} : vector<32x128xf32>, vector<128x128xf32>, vector<32x128xf32> -> vector<32x128xf32>
    %29 = vector.shape_cast %25 : vector<32x128xf32> to vector<2x16x128xf32>
    %cst_20 = arith.constant 0.000000e+00 : f32
    %30 = vector.broadcast %cst_20 : f32 to vector<2x1x128xf32>
    %31 = tpu.concatenate %30, %29, %30 in 1 : vector<2x1x128xf32>, vector<2x16x128xf32>, vector<2x1x128xf32> -> vector<2x18x128xf32>
    %32 = vector.extract_strided_slice %31 {offsets = [0, 0, 0], sizes = [2, 16, 128], strides = [1, 1, 1]} : vector<2x18x128xf32> to vector<2x16x128xf32>
    %33 = vector.shape_cast %32 : vector<2x16x128xf32> to vector<32x128xf32>
    %c0_21 = arith.constant 0 : index
    %c0_22 = arith.constant 0 : index
    %c0_23 = arith.constant 0 : index
    %34 = vector.load %arg5[%c0_21, %c0_22, %c0_23] : memref<3x128x128xf32, #tpu.memory_space<vmem>>, vector<1x128x128xf32>
    %35 = vector.shape_cast %34 : vector<1x128x128xf32> to vector<128x128xf32>
    %cst_24 = arith.constant dense<0.000000e+00> : vector<32x128xf32>
    %36 = tpu.matmul %33, %35, %cst_24 {dimension_numbers = #tpu.dot_dimension_numbers<[1], [0], [0], [1], [0, 0, 1, 1], [], []>} : vector<32x128xf32>, vector<128x128xf32>, vector<32x128xf32> -> vector<32x128xf32>
    %37 = arith.addf %28, %36 : vector<32x128xf32>
    %38 = vector.extract_strided_slice %31 {offsets = [0, 2, 0], sizes = [2, 16, 128], strides = [1, 1, 1]} : vector<2x18x128xf32> to vector<2x16x128xf32>
    %39 = vector.shape_cast %38 : vector<2x16x128xf32> to vector<32x128xf32>
    %c2_25 = arith.constant 2 : index
    %c0_26 = arith.constant 0 : index
    %c0_27 = arith.constant 0 : index
    %40 = vector.load %arg5[%c2_25, %c0_26, %c0_27] : memref<3x128x128xf32, #tpu.memory_space<vmem>>, vector<1x128x128xf32>
    %41 = vector.shape_cast %40 : vector<1x128x128xf32> to vector<128x128xf32>
    %cst_28 = arith.constant dense<0.000000e+00> : vector<32x128xf32>
    %42 = tpu.matmul %39, %41, %cst_28 {dimension_numbers = #tpu.dot_dimension_numbers<[1], [0], [0], [1], [0, 0, 1, 1], [], []>} : vector<32x128xf32>, vector<128x128xf32>, vector<32x128xf32> -> vector<32x128xf32>
    %43 = arith.addf %37, %42 : vector<32x128xf32>
    %c0_29 = arith.constant 0 : index
    %c0_30 = arith.constant 0 : index
    %44 = vector.load %arg6[%c0_29, %c0_30] : memref<1x128xf32, #tpu.memory_space<vmem>>, vector<1x128xf32>
    %45 = vector.broadcast %44 : vector<1x128xf32> to vector<32x128xf32>
    %46 = arith.mulf %43, %45 : vector<32x128xf32>
    %c0_31 = arith.constant 0 : index
    %c0_32 = arith.constant 0 : index
    %47 = vector.load %arg7[%c0_31, %c0_32] : memref<1x128xf32, #tpu.memory_space<vmem>>, vector<1x128xf32>
    %48 = vector.broadcast %47 : vector<1x128xf32> to vector<32x128xf32>
    %49 = arith.addf %46, %48 : vector<32x128xf32>
    %50 = vector.extract_strided_slice %0 {offsets = [0, 1, 0], sizes = [2, 16, 64], strides = [1, 1, 1]} : vector<2x18x64xf32> to vector<2x16x64xf32>
    %51 = vector.shape_cast %50 : vector<2x16x64xf32> to vector<32x64xf32>
    %c0_33 = arith.constant 0 : index
    %c0_34 = arith.constant 0 : index
    %52 = vector.load %arg8[%c0_33, %c0_34] : memref<64x128xf32, #tpu.memory_space<vmem>>, vector<64x128xf32>
    %cst_35 = arith.constant dense<0.000000e+00> : vector<32x128xf32>
    %53 = tpu.matmul %51, %52, %cst_35 {dimension_numbers = #tpu.dot_dimension_numbers<[1], [0], [0], [1], [0, 0, 1, 1], [], []>} : vector<32x64xf32>, vector<64x128xf32>, vector<32x128xf32> -> vector<32x128xf32>
    %c0_36 = arith.constant 0 : index
    %c0_37 = arith.constant 0 : index
    %54 = vector.load %arg9[%c0_36, %c0_37] : memref<1x128xf32, #tpu.memory_space<vmem>>, vector<1x128xf32>
    %55 = vector.broadcast %54 : vector<1x128xf32> to vector<32x128xf32>
    %56 = arith.mulf %53, %55 : vector<32x128xf32>
    %c0_38 = arith.constant 0 : index
    %c0_39 = arith.constant 0 : index
    %57 = vector.load %arg10[%c0_38, %c0_39] : memref<1x128xf32, #tpu.memory_space<vmem>>, vector<1x128xf32>
    %58 = vector.broadcast %57 : vector<1x128xf32> to vector<32x128xf32>
    %59 = arith.addf %56, %58 : vector<32x128xf32>
    %60 = arith.addf %49, %59 : vector<32x128xf32>
    %cst_40 = arith.constant 0.000000e+00 : f32
    %61 = vector.broadcast %cst_40 : f32 to vector<32x128xf32>
    %62 = arith.maximumf %60, %61 : vector<32x128xf32>
    %63 = vector.shape_cast %62 : vector<32x128xf32> to vector<2x16x128xf32>
    %c0_41 = arith.constant 0 : index
    %c0_42 = arith.constant 0 : index
    %c0_43 = arith.constant 0 : index
    %64 = vector.load %arg11[%c0_41, %c0_42, %c0_43] : memref<2x16x128xf32, #tpu.memory_space<vmem>>, vector<2x16x128xf32>
    tpu.vector_store %arg11[%c0_41, %c0_42, %c0_43], %63 {strides = array<i32>} : memref<2x16x128xf32, #tpu.memory_space<vmem>>, vector<2x16x128xf32>,
    return
  }
  func.func @transform_0(%arg0: i32) -> (i32, i32, i32) {
    %c0_i32 = arith.constant 0 : i32
    %c0_i32_0 = arith.constant 0 : i32
    %c0_i32_1 = arith.constant 0 : i32
    return %arg0, %c0_i32, %c0_i32_0 : i32, i32, i32
  }
  func.func @transform_1(%arg0: i32) -> (i32, i32, i32) {
    %c0_i32 = arith.constant 0 : i32
    %c0_i32_0 = arith.constant 0 : i32
    %c0_i32_1 = arith.constant 0 : i32
    %c0_i32_2 = arith.constant 0 : i32
    return %c0_i32, %c0_i32_0, %c0_i32_1 : i32, i32, i32
  }
  func.func @transform_2(%arg0: i32) -> (i32, i32) {
    %c0_i32 = arith.constant 0 : i32
    %c0_i32_0 = arith.constant 0 : i32
    %c0_i32_1 = arith.constant 0 : i32
    return %c0_i32, %c0_i32_0 : i32, i32
  }
  func.func @transform_3(%arg0: i32) -> (i32, i32) {
    %c0_i32 = arith.constant 0 : i32
    %c0_i32_0 = arith.constant 0 : i32
    %c0_i32_1 = arith.constant 0 : i32
    return %c0_i32, %c0_i32_0 : i32, i32
  }
  func.func @transform_4(%arg0: i32) -> (i32, i32, i32) {
    %c0_i32 = arith.constant 0 : i32
    %c0_i32_0 = arith.constant 0 : i32
    %c0_i32_1 = arith.constant 0 : i32
    %c0_i32_2 = arith.constant 0 : i32
    return %c0_i32, %c0_i32_0, %c0_i32_1 : i32, i32, i32
  }
  func.func @transform_5(%arg0: i32) -> (i32, i32) {
    %c0_i32 = arith.constant 0 : i32
    %c0_i32_0 = arith.constant 0 : i32
    %c0_i32_1 = arith.constant 0 : i32
    return %c0_i32, %c0_i32_0 : i32, i32
  }
  func.func @transform_6(%arg0: i32) -> (i32, i32) {
    %c0_i32 = arith.constant 0 : i32
    %c0_i32_0 = arith.constant 0 : i32
    %c0_i32_1 = arith.constant 0 : i32
    return %c0_i32, %c0_i32_0 : i32, i32
  }
  func.func @transform_7(%arg0: i32) -> (i32, i32) {
    %c0_i32 = arith.constant 0 : i32
    %c0_i32_0 = arith.constant 0 : i32
    %c0_i32_1 = arith.constant 0 : i32
    return %c0_i32, %c0_i32_0 : i32, i32
  }
  func.func @transform_8(%arg0: i32) -> (i32, i32) {
    %c0_i32 = arith.constant 0 : i32
    %c0_i32_0 = arith.constant 0 : i32
    %c0_i32_1 = arith.constant 0 : i32
    return %c0_i32, %c0_i32_0 : i32, i32
  }
  func.func @transform_9(%arg0: i32) -> (i32, i32) {
    %c0_i32 = arith.constant 0 : i32
    %c0_i32_0 = arith.constant 0 : i32
    %c0_i32_1 = arith.constant 0 : i32
    return %c0_i32, %c0_i32_0 : i32, i32
  }
  func.func @transform_10(%arg0: i32) -> (i32, i32, i32) {
    %c0_i32 = arith.constant 0 : i32
    %c0_i32_0 = arith.constant 0 : i32
    %c0_i32_1 = arith.constant 0 : i32
    return %arg0, %c0_i32, %c0_i32_0 : i32, i32, i32
  }
}

</mosaic_0001>

<bundles_post_ra>
// kernel: tpu_custom_call.1
= control target key start
LH: loop header
LB: loop body
LE: loop exit
PB: predicated region body
PF: predicated region fallthrough
CT: control target
= control target key end

     0   :  { %15 = vsyncpa [#allocation3], 0  ;;  %s1820_s0 = inlined_call_operand.vmem [shape: f32[2,18,64], index: 0, kind: input, shape index: {}]   ;;  %s1821_s1 = inlined_call_operand.hbm [shape: f32[3,64,128], index: 1, kind: input, shape index: {}]   ;;  %s1822_s2 = inlined_call_operand.vmem [shape: f32[1,128], index: 2, kind: input, shape index: {}]   ;;  %s1823_s3 = inlined_call_operand.vmem [shape: f32[1,128], index: 3, kind: input, shape index: {}]   ;;  %s1824_s4 = inlined_call_operand.hbm [shape: f32[3,128,128], index: 4, kind: input, shape index: {}]   ;;  %s1825_s5 = inlined_call_operand.vmem [shape: f32[1,128], index: 5, kind: input, shape index: {}]   ;;  %s1826_s6 = inlined_call_operand.vmem [shape: f32[1,128], index: 6, kind: input, shape index: {}]   ;;  %s1827_s7 = inlined_call_operand.vmem [shape: f32[64,128], index: 7, kind: input, shape index: {}]   ;;  %s1828_s8 = inlined_call_operand.vmem [shape: f32[1,128], index: 8, kind: input, shape index: {}]   ;;  %s1829_s9 = inlined_call_operand.vmem [shape: f32[1,128], index: 9, kind: input, shape index: {}]   ;;  %s1830_s10 = inlined_call_operand.hbm [shape: f32[2,16,128], index: 10, kind: output, shape index: {}]  }
   0x1   :  { %16 = vsyncpa [#allocation6], 0 }
   0x2   :  { %17 = vsyncpa [#allocation4], 0  ;;  %s1538_s13 = smov [#allocation2]   ;;  %s1466_s17 = scalar_lea.hbm %s1821_s1, 3072 }
   0x3   :  { %s25_s14 = sshll.u32 %s1538_s13, 4  ;;  %p1467_p0 = scmp.ne.s32.totalorder %s1821_s1, %s1466_s17  ;;  %s26_s14 = int_to_ptr.vmem [resolvable:$true] %s25_s14 }
   0x4   :  { %p1470_p1 = scmp.lt.u32.totalorder %s1466_s17, %s1821_s1 }
   0x6   :  { %p1472_p2 = pnand %p1470_p1, %p1467_p0 }
   0x8   :  { %1475 = shalt.err (!%p1472_p2)
}
   0x9   :  { %s1476_s22 = scalar_lea.vmem %s26_s14, 3072  ;;  %p1481_p4 = scmp.lt.s32.totalorder %s26_s14, %s26_s14 }
   0xa   :  { %p1477_p3 = scmp.ne.s32.totalorder %s26_s14, %s1476_s22  ;;  %p1482_p5 = scmp.lt.s32.totalorder %s1476_s22, %s1476_s22 }
   0xc   :  { %p1483_p6 = por %p1482_p5, %p1481_p4 }
   0xe   :  { %p1484_p7 = pnand %p1483_p6, %p1477_p3 }
  0x10   :  { %1487 = shalt.err (!%p1484_p7)
}
  0x11   :  { %s1539_s23 = smov 128   ;;  %s1540_s24 = smov 8  }
  0x12   :  { %31 = dma.hbm_to_vmem [thread:$0]  %s1821_s1, 3072, %s26_s14, [#allocation3], %s1539_s23, %s1539_s23, %s1540_s24  }
  0x13   :  { %s1541_s27 = smov [#allocation5]   ;;  %s1488_s11 = scalar_lea.hbm %s1824_s4, 6144 }
  0x14   :  { %s41_s28 = sshll.u32 %s1541_s27, 4  ;;  %p1489_p8 = scmp.ne.s32.totalorder %s1824_s4, %s1488_s11  ;;  %s42_s28 = int_to_ptr.vmem [resolvable:$true] %s41_s28 }
  0x15   :  { %p1492_p9 = scmp.lt.u32.totalorder %s1488_s11, %s1824_s4 }
  0x17   :  { %p1494_p10 = pnand %p1492_p9, %p1489_p8 }
  0x19   :  { %1497 = shalt.err (!%p1494_p10)
}
  0x1a   :  { %s1498_s17 = scalar_lea.vmem %s42_s28, 6144  ;;  %p1503_p12 = scmp.lt.s32.totalorder %s42_s28, %s42_s28 }
  0x1b   :  { %p1499_p11 = scmp.ne.s32.totalorder %s42_s28, %s1498_s17  ;;  %p1504_p13 = scmp.lt.s32.totalorder %s1498_s17, %s1498_s17 }
  0x1d   :  { %p1505_p0 = por %p1504_p13, %p1503_p12 }
  0x1f   :  { %p1506_p1 = pnand %p1505_p0, %p1499_p11 }
  0x21   :  { %1509 = shalt.err (!%p1506_p1)
}
  0x22   :  { %47 = dma.hbm_to_vmem [thread:$0]  %s1824_s4, 6144, %s42_s28, [#allocation6], %s1539_s23, %s1539_s23, %s1540_s24  }
  0x23   :  { %1532 = dma.done.wait [#allocation3], 3072  }
  0x24   :  { %1533 = vsyncadd [#allocation3], 4294964224 }
  0x25   :  { %1534 = dma.done.wait [#allocation6], 6144  }
  0x26   :  { %1535 = vsyncadd [#allocation6], 4294961152  ;;  %v96_v0 = vld [vmem:[#allocation2 + $0x40] sm:$0xff]  ;;  %v97_v1 = vld [vmem:[#allocation2 + $0x48] sm:$0xff]  ;;  %vm84_vm0 = vcmask 1046528   ;;  %vm104_vm1 = vcmask 523264  }
  0x27   :  { %v98_v2 = vld [vmem:[#allocation2 + $0x50] sm:$0xff]  ;;  %v1285_v3 = vpack.c.bf16 %v97_v1, %v96_v0  ;;  %v99_v4 = vld [vmem:[#allocation2 + $0x58] sm:$0xff]  ;;  %v100_v6 = vld [vmem:[#allocation2 + $0x60] sm:$0xff]  ;;  %vm291_vm2 = vcmask 1045504   ;;  %vm455_vm3 = vcmask 1040384  }
  0x28   :  { %v1289_v5 = vpack.c.bf16 %v99_v4, %v98_v2  ;;  %v101_v7 = vld [vmem:[#allocation2 + $0x68] sm:$0xff]  ;;  %v1631_v8 = vld [vmem:[%s1820_s0] sm:$0xff]  ;;  %v1636_v9 = vld [vmem:[%s1820_s0 + $0x8] sm:$0xff] }
  0x29   :  { %1286 = vmatprep.subr.bf16.mxu0 %v1285_v3  ;;  %v85_v10 = vrot.slane %v1631_v8, 1  ;;  %v86_v11 = vrot.slane %v1636_v9, 1  ;;  %v1293_v12 = vpack.c.bf16 %v101_v7, %v100_v6  ;;  %v102_v13 = vld [vmem:[#allocation2 + $0x70] sm:$0xff]  ;;  %v103_v14 = vld [vmem:[#allocation2 + $0x78] sm:$0xff]  ;;  %v70_v16 = vld [vmem:[#allocation2] sm:$0xff]  ;;  %v292_v0 = vrot.slane %v1631_v8, 2 }
  0x2a   :  { %1288 = vmatpush3.bf16.msra.mxu0 %v1285_v3  ;;  %v71_v17 = vld [vmem:[#allocation2 + $0x8] sm:$0xff]  ;;  %v1297_v18 = vpack.c.bf16 %v103_v14, %v102_v13  ;;  %v1648_v19 = vld [vmem:[%s1820_s0 + $0x10] sm:$0x3]  ;;  %v1658_v21 = vld [vmem:[%s1820_s0 + $0x20] sm:$0xff]  ;;  %v293_v1 = vrot.slane %v1636_v9, 2 }
  0x2b   :  { %1290 = vmatprep.subr.bf16.mxu0 %v1289_v5  ;;  %v1641_v15 = vsel %vm84_vm0, %v85_v10, %v86_v11  ;;  %v1653_v20 = vld [vmem:[%s1820_s0 + $0x18] sm:$0xff]  ;;  %v472_v22 = vld [vmem:[#allocation5] sm:$0xff]  ;;  %v474_v24 = vld [vmem:[#allocation5 + $0x10] sm:$0xff]  ;;  %v88_v27 = vrot.slane %v1648_v19, 1  ;;  %v1301_v31 = vpack.c.bf16 %v71_v17, %v70_v16  ;;  %v91_v33 = vrot.slane %v1658_v21, 1 }
  0x2c   :  { %1099 = vmatprep.mubr.msk.f32.mxu0 %vm104_vm1, %v1641_v15  ;;  %v473_v23 = vld [vmem:[#allocation5 + $0x8] sm:$0xff]  ;;  %v475_v26 = vld [vmem:[#allocation5 + $0x18] sm:$0xff]  ;;  %v476_v29 = vld [vmem:[#allocation5 + $0x20] sm:$0xff]  ;;  %v90_v32 = vrot.slane %v1653_v20, 1  ;;  %v297_v10 = vrot.slane %v1653_v20, 2 }
  0x2d   :  { %v1333_v25 = vpack.c.bf16 %v473_v23, %v472_v22  ;;  %v1337_v28 = vpack.c.bf16 %v475_v26, %v474_v24  ;;  %v477_v30 = vld [vmem:[#allocation5 + $0x28] sm:$0xff]  ;;  %v1666_v34 = vld [vmem:[%s1820_s0 + $0x28] sm:$0x3]  ;;  %v72_v35 = vld [vmem:[#allocation2 + $0x10] sm:$0xff]  ;;  %v1669_v38 = vsel %vm84_vm0, %v86_v11, %v88_v27  ;;  %v298_v11 = vrot.slane %v1658_v21, 2 }
  0x2e   :  { %1292 = vmatpush3.bf16.msra.mxu0 %v1289_v5  ;;  %v73_v36 = vld [vmem:[#allocation2 + $0x18] sm:$0xff]  ;;  %v1341_v37 = vpack.c.bf16 %v477_v30, %v476_v29  ;;  %v93_v39 = vrot.slane %v1666_v34, 1  ;;  %v478_v40 = vld [vmem:[#allocation5 + $0x30] sm:$0xff]  ;;  %v1673_v43 = vsel %vm84_vm0, %v90_v32, %v91_v33  ;;  %v74_v44 = vld [vmem:[#allocation2 + $0x20] sm:$0xff]  ;;  %v294_v5 = vsel %vm291_vm2, %v292_v0, %v293_v1 }
  0x2f   :  { %1294 = vmatprep.subr.bf16.mxu0 %v1293_v12  ;;  %1334 = vmatprep.subr.bf16.mxu1 %v1333_v25  ;;  %v479_v41 = vld [vmem:[#allocation5 + $0x38] sm:$0xff]  ;;  %v1305_v42 = vpack.c.bf16 %v73_v36, %v72_v35  ;;  %v75_v45 = vld [vmem:[#allocation2 + $0x28] sm:$0xff]  ;;  %v480_v48 = vld [vmem:[#allocation5 + $0x40] sm:$0xff]  ;;  %v300_v13 = vrot.slane %v1666_v34, 2  ;;  %v299_v14 = vsel %vm291_vm2, %v297_v10, %v298_v11 }
  0x30   :  { %1336 = vmatpush3.bf16.msra.mxu1 %v1333_v25  ;;  %v1345_v46 = vpack.c.bf16 %v479_v41, %v478_v40  ;;  %v1680_v47 = vsel %vm84_vm0, %v91_v33, %v93_v39  ;;  %v481_v49 = vld [vmem:[#allocation5 + $0x48] sm:$0xff]  ;;  %v1309_v50 = vpack.c.bf16 %v75_v45, %v74_v44  ;;  %v76_v51 = vld [vmem:[#allocation2 + $0x30] sm:$0xff]  ;;  %v77_v52 = vld [vmem:[#allocation2 + $0x38] sm:$0xff] }
  0x31   :  { %1338 = vmatprep.subr.bf16.mxu1 %v1337_v28  ;;  %v1349_v53 = vpack.c.bf16 %v481_v49, %v480_v48  ;;  %v482_v54 = vld [vmem:[#allocation5 + $0x50] sm:$0xff]  ;;  %v483_v55 = vld [vmem:[#allocation5 + $0x58] sm:$0xff]  ;;  %v1313_v56 = vpack.c.bf16 %v77_v52, %v76_v51  ;;  %v303_v57 = vld [vmem:[#allocation2 + $0x80] sm:$0xff]  ;;  %v301_v16 = vsel %vm291_vm2, %v298_v11, %v300_v13 }
  0x32   :  { %1296 = vmatpush3.bf16.msra.mxu0 %v1293_v12  ;;  %v304_v58 = vld [vmem:[#allocation2 + $0x88] sm:$0xff]  ;;  %v1353_v59 = vpack.c.bf16 %v483_v55, %v482_v54  ;;  %v305_v61 = vld [vmem:[#allocation2 + $0x90] sm:$0xff]  ;;  %v306_v62 = vld [vmem:[#allocation2 + $0x98] sm:$0xff] }
  0x33   :  { %1298 = vmatprep.subr.bf16.mxu0 %v1297_v18  ;;  %v1317_v60 = vpack.c.bf16 %v304_v58, %v303_v57  ;;  %v1321_v63 = vpack.c.bf16 %v306_v62, %v305_v61  ;;  %v307_v2 = vld [vmem:[#allocation2 + $0xa0] sm:$0xff]  ;;  %v308_v3 = vld [vmem:[#allocation2 + $0xa8] sm:$0xff]  ;;  %v309_v6 = vld [vmem:[#allocation2 + $0xb0] sm:$0xff] }
  0x34   :  { %1340 = vmatpush3.bf16.msra.mxu1 %v1337_v28  ;;  %v1325_v4 = vpack.c.bf16 %v308_v3, %v307_v2  ;;  %v310_v7 = vld [vmem:[#allocation2 + $0xb8] sm:$0xff]  ;;  %v484_v17 = vld [vmem:[#allocation5 + $0x60] sm:$0xff]  ;;  %v436_v24 = vld [vmem:[#allocation5 + $0x88] sm:$0xff] }
  0x35   :  { %1342 = vmatprep.subr.bf16.mxu1 %v1341_v37  ;;  %v435_v23 = vld [vmem:[#allocation5 + $0x80] sm:$0xff]  ;;  %v804_v26 = vld [vmem:[%s1827_s7] sm:$0xff]  ;;  %v807_v29 = vld [vmem:[%s1827_s7 + $0x18] sm:$0xff] }
  0x36   :  { %1300 = vmatpush3.bf16.msra.mxu0 %v1297_v18  ;;  %v485_v18 = vld [vmem:[#allocation5 + $0x68] sm:$0xff]  ;;  %v1365_v25 = vpack.c.bf16 %v436_v24, %v435_v23  ;;  %v806_v28 = vld [vmem:[%s1827_s7 + $0x10] sm:$0xff]  ;;  %v809_v32 = vld [vmem:[%s1827_s7 + $0x28] sm:$0xff] }
  0x37   :  { %1302 = vmatprep.subr.bf16.mxu0 %v1301_v31  ;;  %v1433_v30 = vpack.c.bf16 %v807_v29, %v806_v28  ;;  %v810_v34 = vld [vmem:[%s1827_s7 + $0x30] sm:$0xff]  ;;  %v811_v35 = vld [vmem:[%s1827_s7 + $0x38] sm:$0xff]  ;;  %v962_v40 = vld [vmem:[%s1823_s3] ss:$0 sm:$0xff] }
  0x38   :  { %1344 = vmatpush3.bf16.msra.mxu1 %v1341_v37  ;;  %v1441_v36 = vpack.c.bf16 %v811_v35, %v810_v34  ;;  %v961_v37 = vld [vmem:[%s1822_s2] ss:$0 sm:$0xff]  ;;  %v438_v52 = vld [vmem:[#allocation5 + $0x98] sm:$0xff]  ;;  %vm1752_vm4 = vmneg %vm455_vm3 }
  0x39   :  { %1100 = vmatmul.mubr.msk.f32.vlgmr.msra.gmra.mrb[0].mxu0 %vm104_vm1, %v1669_v38  ;;  %1346 = vmatprep.subr.bf16.mxu1 %v1345_v46  ;;  %v437_v51 = vld [vmem:[#allocation5 + $0x90] sm:$0xff]  ;;  %v439_v0 = vld [vmem:[#allocation5 + $0xa0] sm:$0xff]  ;;  %v442_v13 = vld [vmem:[#allocation5 + $0xb8] sm:$0xff] }
  0x3a   :  { %1304 = vmatpush3.bf16.msra.mxu0 %v1301_v31  ;;  %1102 = vmatprep.mubr.msk.f32.mxu0 %vm104_vm1, %v1673_v43  ;;  %v808_v31 = vld [vmem:[%s1827_s7 + $0x20] sm:$0xff]  ;;  %v444_v23 = vld [vmem:[#allocation5 + $0xc8] sm:$0xff]  ;;  %v692_v55 = vld [vmem:[#allocation5 + $0x178] sm:$0xff] }
  0x3b   :  { %1306 = vmatprep.subr.bf16.mxu0 %v1305_v42  ;;  %v1437_v33 = vpack.c.bf16 %v809_v32, %v808_v31  ;;  %v448_v28 = vld [vmem:[#allocation5 + $0xe8] sm:$0xff]  ;;  %v450_v31 = vld [vmem:[#allocation5 + $0xf8] sm:$0xff] }
  0x3c   :  { %1348 = vmatpush3.bf16.msra.mxu1 %v1345_v46  ;;  %v678_v34 = vld [vmem:[#allocation5 + $0x108] sm:$0xff] }
  0x3d   :  { %1103 = vmatmul.mubr.msk.f32.gmra.mrb[2].mxu0 %vm104_vm1, %v1680_v47  ;;  %1350 = vmatprep.subr.bf16.mxu1 %v1349_v53 }
  0x3e   :  { %1308 = vmatpush3.bf16.msra.mxu0 %v1305_v42  ;;  %1121 = vmatprep.mubr.msk.f32.mxu0 %vm104_vm1, %v1631_v8  ;;  %v1329_v8 = vpack.c.bf16 %v310_v7, %v309_v6 }
  0x3f   :  { %1310 = vmatprep.subr.bf16.mxu0 %v1309_v50 }
  0x40   :  { %1352 = vmatpush3.bf16.msra.mxu1 %v1349_v53 }
  0x41   :  { %1354 = vmatprep.subr.bf16.mxu1 %v1353_v59 }
  0x42   :  { %1312 = vmatpush3.bf16.msra.mxu0 %v1309_v50 }
  0x43   :  { %1314 = vmatprep.subr.bf16.mxu0 %v1313_v56 }
  0x44   :  { %1356 = vmatpush3.bf16.msra.mxu1 %v1353_v59 }
  0x46   :  { %1316 = vmatpush3.bf16.msra.mxu0 %v1313_v56 }
  0x47   :  { %1318 = vmatprep.subr.bf16.mxu0 %v1317_v60 }
  0x49   :  { %1122 = vmatmul.mubr.msk.f32.vlgmr.msra.gmra.mrb[0].mxu0 %vm104_vm1, %v1636_v9  ;;  %v295_v9 = vrot.slane %v1648_v19, 2  ;;  %v1357_v19 = vpack.c.bf16 %v485_v18, %v484_v17 }
  0x4a   :  { %1320 = vmatpush3.bf16.msra.mxu0 %v1317_v60  ;;  %1124 = vmatprep.mubr.msk.f32.mxu0 %vm104_vm1, %v1653_v20  ;;  %v486_v20 = vld [vmem:[#allocation5 + $0x70] sm:$0xff]  ;;  %v1369_v60 = vpack.c.bf16 %v438_v52, %v437_v51  ;;  %v689_v51 = vld [vmem:[#allocation5 + $0x160] sm:$0xff]  ;;  %v690_v52 = vld [vmem:[#allocation5 + $0x168] sm:$0xff] }
  0x4b   :  { %1322 = vmatprep.subr.bf16.mxu0 %v1321_v63  ;;  %v296_v12 = vsel %vm291_vm2, %v293_v1, %v295_v9  ;;  %1358 = vmatprep.subr.bf16.mxu1 %v1357_v19  ;;  %v440_v1 = vld [vmem:[#allocation5 + $0xa8] sm:$0xff] }
  0x4c   :  { %1360 = vmatpush3.bf16.msra.mxu1 %v1357_v19  ;;  %v1373_v7 = vpack.c.bf16 %v440_v1, %v439_v0  ;;  %v967_v0 = vld [vmem:[%s1825_s5] ss:$0 sm:$0xff]  ;;  %s1542_s5 = smov [#allocation7]  }
  0x4d   :  { %1125 = vmatmul.mubr.msk.f32.gmra.mrb[2].mxu0 %vm104_vm1, %v1658_v21  ;;  %v487_v21 = vld [vmem:[#allocation5 + $0x78] sm:$0xff] }
  0x4e   :  { %1324 = vmatpush3.bf16.msra.mxu0 %v1321_v63  ;;  %1143 = vmatprep.mubr.msk.f32.mxu0 %vm104_vm1, %v294_v5  ;;  %v1361_v22 = vpack.c.bf16 %v487_v21, %v486_v20 }
  0x4f   :  { %1326 = vmatprep.subr.bf16.mxu0 %v1325_v4 }
  0x50   :  { %1362 = vmatprep.subr.bf16.mxu1 %v1361_v22 }
  0x51   :  { %1364 = vmatpush3.bf16.msra.mxu1 %v1361_v22  ;;  %v443_v22 = vld [vmem:[#allocation5 + $0xc0] sm:$0xff] }
  0x52   :  { %1328 = vmatpush3.bf16.msra.mxu0 %v1325_v4  ;;  %1366 = vmatprep.subr.bf16.mxu1 %v1365_v25  ;;  %v1381_v24 = vpack.c.bf16 %v444_v23, %v443_v22 }
  0x53   :  { %1330 = vmatprep.subr.bf16.mxu0 %v1329_v8 }
  0x56   :  { %1332 = vmatpush3.bf16.msra.mxu0 %v1329_v8 }
  0x59   :  { %1144 = vmatmul.mubr.msk.f32.vlgmr.msra.gmra.mrb[0].mxu0 %vm104_vm1, %v296_v12  ;;  %v441_v12 = vld [vmem:[#allocation5 + $0xb0] sm:$0xff] }
  0x5a   :  { %1146 = vmatprep.mubr.msk.f32.mxu0 %vm104_vm1, %v299_v14  ;;  %v1377_v19 = vpack.c.bf16 %v442_v13, %v441_v12 }
  0x5d   :  { %1147 = vmatmul.mubr.msk.f32.gmra.mrb[2].mxu0 %vm104_vm1, %v301_v16 }
  0x5e   :  { %1279 = vmatprep.mubr.msk.f32.mxu0 %vm104_vm1, %v1641_v15  ;;  %v805_v15 = vld [vmem:[%s1827_s7 + $0x8] sm:$0xff] }
  0x5f   :  { %v1429_v27 = vpack.c.bf16 %v805_v15, %v804_v26  ;;  %v446_v26 = vld [vmem:[#allocation5 + $0xd8] sm:$0xff] }
  0x61   :  { %1430 = vmatprep.subr.bf16.mxu0 %v1429_v27 }
  0x62   :  { %1432 = vmatpush3.bf16.msra.mxu0 %v1429_v27  ;;  %v447_v27 = vld [vmem:[#allocation5 + $0xe0] sm:$0xff] }
  0x63   :  { %1434 = vmatprep.subr.bf16.mxu0 %v1433_v30  ;;  %v1389_v29 = vpack.c.bf16 %v448_v28, %v447_v27 }
  0x66   :  { %1436 = vmatpush3.bf16.msra.mxu0 %v1433_v30  ;;  %v449_v30 = vld [vmem:[#allocation5 + $0xf0] sm:$0xff] }
  0x67   :  { %1438 = vmatprep.subr.bf16.mxu0 %v1437_v33  ;;  %v1393_v32 = vpack.c.bf16 %v450_v31, %v449_v30 }
  0x6a   :  { %1440 = vmatpush3.bf16.msra.mxu0 %v1437_v33  ;;  %v677_v33 = vld [vmem:[#allocation5 + $0x100] sm:$0xff] }
  0x6b   :  { %1442 = vmatprep.subr.bf16.mxu0 %v1441_v36  ;;  %v1397_v35 = vpack.c.bf16 %v678_v34, %v677_v33 }
  0x6e   :  { %1444 = vmatpush3.bf16.msra.mxu0 %v1441_v36  ;;  %v679_v36 = vld [vmem:[#allocation5 + $0x110] sm:$0xff] }
  0x71   :  { %1280 = vmatmul.mubr.msk.f32.vlgmr.msra.gmra.mrb[4].mxu0 %vm104_vm1, %v1669_v38 }
  0x72   :  { %1282 = vmatprep.mubr.msk.f32.mxu0 %vm104_vm1, %v1673_v43 }
  0x75   :  { %1283 = vmatmul.mubr.msk.f32.gmra.mrb[6].mxu0 %vm104_vm1, %v1680_v47 }
 0x12c   :  { %v1145_v39 = vpop.f32.mrb[0].mxu0 }
 0x12d   :  { %v416_v41 = vmul.f32 %v1145_v39, %v961_v37  ;;  %v385_v42 = vpop.f32.mrb[1].mxu0 }
 0x12e   :  { %v415_v44 = vmul.f32 %v961_v37, %v385_v42 }
 0x12f   :  { %v1744_v45 = vadd.f32 %v962_v40, %v416_v41  ;;  %v682_v41 = vld [vmem:[#allocation5 + $0x128] sm:$0xff] }
 0x130   :  { %v426_v38 = vadd.f32 %v962_v40, %v415_v44  ;;  %v1148_v43 = vpop.f32.mrb[2].mxu0  ;;  %v683_v44 = vld [vmem:[#allocation5 + $0x130] sm:$0xff] }
 0x131   :  { %v431_v46 = vmax.f32 %v1744_v45, 0.0  ;;  %v418_v47 = vmul.f32 %v1148_v43, %v961_v37  ;;  %v395_v48 = vpop.f32.mrb[3].mxu0 }
 0x132   :  { %v430_v49 = vmax.f32 %v426_v38, 0.0  ;;  %v417_v50 = vmul.f32 %v961_v37, %v395_v48  ;;  %v680_v37 = vld [vmem:[#allocation5 + $0x118] sm:$0xff]  ;;  %v686_v48 = vld [vmem:[#allocation5 + $0x148] sm:$0xff] }
 0x133   :  { %v457_v53 = vrot.slane %v431_v46, 7  ;;  %v1749_v54 = vadd.f32 %v962_v40, %v418_v47  ;;  %v1401_v39 = vpack.c.bf16 %v680_v37, %v679_v36  ;;  %v684_v38 = vld [vmem:[#allocation5 + $0x138] sm:$0xff]  ;;  %v685_v47 = vld [vmem:[#allocation5 + $0x140] sm:$0xff] }
 0x134   :  { %v1756_v56 = vadd.f32 %v962_v40, %v417_v50  ;;  %v456_v57 = vrot.slane %v430_v49, 7  ;;  %v681_v40 = vld [vmem:[#allocation5 + $0x120] sm:$0xff]  ;;  %v1409_v43 = vpack.c.bf16 %v684_v38, %v683_v44  ;;  %v1413_v45 = vpack.c.bf16 %v686_v48, %v685_v47 }
 0x135   :  { %v470_v58 = vsel %vm455_vm3, %v457_v53, 0.0  ;;  %v433_v59 = vmax.f32 %v1749_v54, 0.0  ;;  %v1405_v42 = vpack.c.bf16 %v682_v41, %v681_v40  ;;  %v691_v54 = vld [vmem:[#allocation5 + $0x170] sm:$0xff] }
 0x136   :  { %v665_v61 = vrot.slane %v470_v58, 2  ;;  %v432_v62 = vmax.f32 %v1756_v56, 0.0  ;;  %1181 = vmatprep.mubr.msk.f32.mxu1 %vm1752_vm4, %v456_v57  ;;  %v458_v63 = vsel %vm455_vm3, %v456_v57, %v457_v53  ;;  %v468_v2 = vsel %vm455_vm3, 0.0, %v456_v57 }
 0x137   :  { %v460_v3 = vrot.slane %v433_v59, 7  ;;  %1182 = vmatmul.mubr.f32.vlgmr.msra.gmra.mrb[0].mxu1 %v458_v63  ;;  %v663_v4 = vrot.slane %v458_v63, 2  ;;  %v662_v5 = vrot.slane %v468_v2, 2  ;;  %v1421_v53 = vpack.c.bf16 %v690_v52, %v689_v51  ;;  %v974_v63 = vld [vmem:[%s1829_s9] ss:$0 sm:$0xff] }
 0x138   :  { %v459_v6 = vrot.slane %v432_v62, 7  ;;  %1368 = vmatpush3.bf16.msra.mxu1 %v1365_v25  ;;  %v445_v25 = vld [vmem:[#allocation5 + $0xd0] sm:$0xff]  ;;  %v1425_v56 = vpack.c.bf16 %v692_v55, %v691_v54 }
 0x139   :  { %1370 = vmatprep.subr.bf16.mxu1 %v1369_v60  ;;  %v664_v8 = vsel %vm291_vm2, %v662_v5, %v663_v4  ;;  %v1771_v9 = vsel %vm291_vm2, %v663_v4, %v665_v61  ;;  %v471_v10 = vsel %vm455_vm3, %v460_v3, 0.0  ;;  %v1385_v15 = vpack.c.bf16 %v446_v26, %v445_v25  ;;  %v973_v61 = vld [vmem:[%s1828_s8] ss:$0 sm:$0xff] }
 0x13a   :  { %1184 = vmatprep.mubr.msk.f32.mxu1 %vm1752_vm4, %v459_v6  ;;  %v461_v11 = vsel %vm455_vm3, %v459_v6, %v460_v3  ;;  %v469_v14 = vsel %vm455_vm3, 0.0, %v459_v6  ;;  %v670_v16 = vrot.slane %v471_v10, 2  ;;  %v968_v3 = vld [vmem:[%s1826_s6] ss:$0 sm:$0xff]  ;;  %s936_s6 = sshll.u32 %s1542_s5, 4  ;;  %s937_s6 = int_to_ptr.vmem [resolvable:$true] %s936_s6 }
 0x13b   :  { %1185 = vmatmul.mubr.f32.gmra.mrb[2].mxu1 %v461_v11  ;;  %v668_v17 = vrot.slane %v461_v11, 2  ;;  %v667_v18 = vrot.slane %v469_v14, 2  ;;  %s1510_s8 = scalar_lea.vmem %s937_s6, 512  ;;  %p1515_p3 = scmp.lt.s32.totalorder %s937_s6, %s937_s6 }
 0x13c   :  { %1372 = vmatpush3.bf16.msra.mxu1 %v1369_v60  ;;  %1219 = vmatprep.mubr.f32.mxu1 %v430_v49  ;;  %v688_v49 = vld [vmem:[#allocation5 + $0x158] sm:$0xff]  ;;  %p1511_p2 = scmp.ne.s32.totalorder %s937_s6, %s1510_s8  ;;  %p1516_p4 = scmp.lt.s32.totalorder %s1510_s8, %s1510_s8 }
 0x13d   :  { %1374 = vmatprep.subr.bf16.mxu1 %v1373_v7  ;;  %v1779_v20 = vsel %vm291_vm2, %v667_v18, %v668_v17  ;;  %v1782_v21 = vsel %vm291_vm2, %v668_v17, %v670_v16 }
 0x13e   :  { %p1517_p5 = por %p1516_p4, %p1515_p3 }
 0x140   :  { %1376 = vmatpush3.bf16.msra.mxu1 %v1373_v7  ;;  %p1518_p6 = pnand %p1517_p5, %p1511_p2 }
 0x141   :  { %1378 = vmatprep.subr.bf16.mxu1 %v1377_v19 }
 0x144   :  { %1380 = vmatpush3.bf16.msra.mxu1 %v1377_v19  ;;  %v1281_v57 = vpop.f32.mrb[4].mxu0 }
 0x145   :  { %1382 = vmatprep.subr.bf16.mxu1 %v1381_v24  ;;  %v878_v58 = vpop.f32.mrb[5].mxu0 }
 0x146   :  { %v904_v1 = vmul.f32 %v973_v61, %v878_v58 }
 0x148   :  { %1384 = vmatpush3.bf16.msra.mxu1 %v1381_v24 }
 0x149   :  { %1386 = vmatprep.subr.bf16.mxu1 %v1385_v15 }
 0x14c   :  { %1388 = vmatpush3.bf16.msra.mxu1 %v1385_v15 }
 0x14d   :  { %1390 = vmatprep.subr.bf16.mxu1 %v1389_v29 }
 0x150   :  { %1392 = vmatpush3.bf16.msra.mxu1 %v1389_v29 }
 0x151   :  { %1394 = vmatprep.subr.bf16.mxu1 %v1393_v32 }
 0x154   :  { %1396 = vmatpush3.bf16.msra.mxu1 %v1393_v32 }
 0x155   :  { %1398 = vmatprep.subr.bf16.mxu1 %v1397_v35 }
 0x157   :  { %1220 = vmatmul.mubr.f32.vlgmr.msra.gmra.mrb[0].mxu1 %v431_v46  ;;  %v687_v46 = vld [vmem:[#allocation5 + $0x150] sm:$0xff] }
 0x158   :  { %1222 = vmatprep.mubr.f32.mxu1 %v432_v62  ;;  %1400 = vmatpush3.bf16.msra.mxu1 %v1397_v35  ;;  %v1417_v50 = vpack.c.bf16 %v688_v49, %v687_v46  ;;  %v905_v62 = vmul.f32 %v1281_v57, %v973_v61 }
 0x159   :  { %1402 = vmatprep.subr.bf16.mxu1 %v1401_v39 }
 0x15a   :  { %v916_v4 = vadd.f32 %v974_v63, %v905_v62 }
 0x15b   :  { %1223 = vmatmul.mubr.f32.gmra.mrb[2].mxu1 %v433_v59  ;;  %v1284_v59 = vpop.f32.mrb[6].mxu0 }
 0x15c   :  { %1404 = vmatpush3.bf16.msra.mxu1 %v1401_v39  ;;  %1257 = vmatprep.mubr.f32.mxu1 %v664_v8  ;;  %v888_v60 = vpop.f32.mrb[7].mxu0  ;;  %v907_v7 = vmul.f32 %v1284_v59, %v973_v61  ;;  %v915_v8 = vadd.f32 %v974_v63, %v904_v1 }
 0x15d   :  { %1406 = vmatprep.subr.bf16.mxu1 %v1405_v42  ;;  %v906_v10 = vmul.f32 %v973_v61, %v888_v60 }
 0x15e   :  { %v918_v16 = vadd.f32 %v974_v63, %v907_v7 }
 0x160   :  { %1408 = vmatpush3.bf16.msra.mxu1 %v1405_v42 }
 0x161   :  { %1410 = vmatprep.subr.bf16.mxu1 %v1409_v43 }
 0x164   :  { %1412 = vmatpush3.bf16.msra.mxu1 %v1409_v43 }
 0x165   :  { %1414 = vmatprep.subr.bf16.mxu1 %v1413_v45 }
 0x168   :  { %1416 = vmatpush3.bf16.msra.mxu1 %v1413_v45 }
 0x169   :  { %1418 = vmatprep.subr.bf16.mxu1 %v1417_v50 }
 0x16c   :  { %1420 = vmatpush3.bf16.msra.mxu1 %v1417_v50 }
 0x16d   :  { %1422 = vmatprep.subr.bf16.mxu1 %v1421_v53 }
 0x170   :  { %1424 = vmatpush3.bf16.msra.mxu1 %v1421_v53 }
 0x171   :  { %1426 = vmatprep.subr.bf16.mxu1 %v1425_v56 }
 0x174   :  { %1428 = vmatpush3.bf16.msra.mxu1 %v1425_v56 }
 0x177   :  { %1258 = vmatmul.mubr.f32.vlgmr.msra.gmra.mrb[0].mxu1 %v1771_v9 }
 0x178   :  { %1260 = vmatprep.mubr.f32.mxu1 %v1779_v20  ;;  %v917_v20 = vadd.f32 %v974_v63, %v906_v10 }
 0x17b   :  { %1261 = vmatmul.mubr.f32.gmra.mrb[2].mxu1 %v1782_v21 }
 0x24a   :  { %v1259_v2 = vpop.f32.mrb[0].mxu1 }
 0x24b   :  { %v790_v5 = vmul.f32 %v1259_v2, %v967_v0  ;;  %v759_v6 = vpop.f32.mrb[1].mxu1 }
 0x24c   :  { %v789_v9 = vmul.f32 %v967_v0, %v759_v6 }
 0x24d   :  { %v801_v11 = vadd.f32 %v968_v3, %v790_v5 }
 0x24e   :  { %v800_v12 = vadd.f32 %v968_v3, %v789_v9  ;;  %v1262_v13 = vpop.f32.mrb[2].mxu1 }
 0x24f   :  { %v920_v14 = vadd.f32 %v916_v4, %v801_v11  ;;  %v792_v17 = vmul.f32 %v1262_v13, %v967_v0  ;;  %v769_v18 = vpop.f32.mrb[3].mxu1 }
 0x250   :  { %v919_v19 = vadd.f32 %v915_v8, %v800_v12  ;;  %v791_v21 = vmul.f32 %v967_v0, %v769_v18 }
 0x251   :  { %v924_v22 = vmax.f32 %v920_v14, 0.0  ;;  %v803_v23 = vadd.f32 %v968_v3, %v792_v17 }
 0x252   :  { %v923_v24 = vmax.f32 %v919_v19, 0.0  ;;  %v802_v25 = vadd.f32 %v968_v3, %v791_v21 }
 0x253   :  { %928 = vst [vmem:[#allocation7 + $0x8] sm:$0xff] %v924_v22  ;;  %v922_v26 = vadd.f32 %v918_v16, %v803_v23 }
 0x254   :  { %927 = vst [vmem:[#allocation7] sm:$0xff] %v923_v24  ;;  %v921_v15 = vadd.f32 %v917_v20, %v802_v25 }
 0x255   :  { %v926_v27 = vmax.f32 %v922_v26, 0.0 }
 0x256   :  { %v925_v28 = vmax.f32 %v921_v15, 0.0 }
 0x257   :  { %930 = vst [vmem:[#allocation7 + $0x18] sm:$0xff] %v926_v27 }
 0x258   :  { %929 = vst [vmem:[#allocation7 + $0x10] sm:$0xff] %v925_v28 }
 0x259   :  { %1521 = shalt.err (!%p1518_p6)
}
 0x25a   :  { %s1522_s16 = scalar_lea.hbm %s1830_s10, 512 }
 0x25b   :  { %p1523_p7 = scmp.ne.s32.totalorder %s1830_s10, %s1522_s16  ;;  %p1526_p8 = scmp.lt.u32.totalorder %s1522_s16, %s1830_s10 }
 0x25d   :  { %p1528_p9 = pnand %p1526_p8, %p1523_p7 }
 0x25f   :  { %1531 = shalt.err (!%p1528_p9)
}
 0x260   :  { %942 = dma.vmem_to_hbm [thread:$0]  %s937_s6, 512, %s1830_s10, [#allocation4], %s1539_s23, %s1539_s23, %s1540_s24  }
 0x261   :  { %1536 = dma.done.wait [#allocation4], 512  }
 0x262   :  { %1537 = vsyncadd [#allocation4], 4294966784 }
 0x263   :  { %946 = vsyncpa [#allocation3], 1 }
 0x264   :  { %947 = vsyncpa [#allocation6], 1 }
 0x265   :  { %948 = vsyncpa [#allocation4], 1 }

</bundles_post_ra>
